<compile_context>
chip_gen: v7x
topology: tpu7x:2x2x1
jax: 0.10.0
libtpu: 0.0.40
codegen_flags: <defaults>
</compile_context>

<pallas_src>
import functools

import jax
import jax.numpy as jnp
from jax import lax
from jax.experimental import pallas as pl
from jax.experimental.pallas import tpu as pltpu


# ----------------------------------------------------------------------------
# Kernels
# ----------------------------------------------------------------------------
def _encoder_kernel_fused(x_ref, w_ref, b_ref, out_ref):
    """Folded-K path: one (tb, ts) block = matmul + bias + ReLU in one shot.

    x_ref : (tb, d_in)  compute dtype (bf16)
    w_ref : (ts, d_in)  compute dtype (bf16)  -- W_enc tile, NOT transposed
    b_ref : (1,  ts)    f32
    out_ref: (tb, ts)   out dtype
    """
    z = lax.dot_general(
        x_ref[...], w_ref[...],
        dimension_numbers=(((1,), (1,)), ((), ())),   # contract shared d_in axis
        preferred_element_type=jnp.float32,
    )
    out_ref[...] = jnp.maximum(z + b_ref[...], 0.0).astype(out_ref.dtype)


def _encoder_kernel_splitk_f32out(x_ref, w_ref, b_ref, out_ref):
    """Split-K path, f32 output: accumulate directly into the resident out block."""
    k = pl.program_id(2)

    @pl.when(k == 0)
    def _():
        out_ref[...] = jnp.broadcast_to(b_ref[...], out_ref.shape)

    out_ref[...] += lax.dot_general(
        x_ref[...], w_ref[...],
        dimension_numbers=(((1,), (1,)), ((), ())),
        preferred_element_type=jnp.float32,
    )

    @pl.when(k == pl.num_programs(2) - 1)
    def _():
        out_ref[...] = jnp.maximum(out_ref[...], 0.0)


def _encoder_kernel_splitk_scratch(x_ref, w_ref, b_ref, out_ref, acc_ref):
    """Split-K path, non-f32 output: f32 scratch accumulator + cast epilogue."""
    k = pl.program_id(2)

    @pl.when(k == 0)
    def _():
        acc_ref[...] = jnp.zeros_like(acc_ref)

    acc_ref[...] += lax.dot_general(
        x_ref[...], w_ref[...],
        dimension_numbers=(((1,), (1,)), ((), ())),
        preferred_element_type=jnp.float32,
    )

    @pl.when(k == pl.num_programs(2) - 1)
    def _():
        out_ref[...] = jnp.maximum(acc_ref[...] + b_ref[...], 0.0).astype(out_ref.dtype)


# ----------------------------------------------------------------------------
# Tiling helpers
# ----------------------------------------------------------------------------
def _pick_tile(dim: int, preferred: int, align: int) -> int:
    """Largest multiple of `align` that divides `dim` and is <= `preferred`.

    Falls back to the full dimension only when `dim` itself is not a multiple
    of `align` (a full-extent block is always legal on TPU).
    """
    if dim % align != 0:
        return dim
    t = min(preferred, dim)
    t -= t % align
    while t >= align:
        if dim % t == 0:
            return t
        t -= align
    return dim


# Safe per-kernel VMEM budget used to decide whether to fold the K axis and to
# size vmem_limit_bytes.  Kept well under v7x's 64 MiB physical VMEM so there
# is headroom for compiler scratch/semaphores; on v5e/v6e (128 MiB) this is
# conservative and larger tb/ts can simply be passed in.
_FOLD_K_VMEM_BUDGET = 48 * 1024 * 1024


def _vmem_need(tb, ts, tk, x_bytes, out_bytes, with_acc):
    need = 2 * tb * tk * x_bytes          # x block, double-buffered
    need += 2 * ts * tk * x_bytes         # W block, double-buffered
    need += 2 * ts * 4                    # bias block (1, ts) f32, double-buffered
    need += 2 * tb * ts * out_bytes       # out block, double-buffered
    if with_acc:
        need += tb * ts * 4               # f32 accumulator scratch
    return need


# ----------------------------------------------------------------------------
# Forward wrapper
# ----------------------------------------------------------------------------
@functools.partial(
    jax.jit, static_argnames=("tb", "ts", "tk", "out_dtype", "compute_dtype"))
def vanilla_encoder_forward(x, w_enc, b_enc, *,
                            tb=512, ts=2048, tk=None,
                            out_dtype=jnp.bfloat16,
                            compute_dtype=jnp.bfloat16):
    """hidden_acts = relu(x @ W_enc.T + b_enc), tiled over (batch, d_sae[, d_in]).

    NOTE: pass W_enc already stored in `compute_dtype` (bf16) at init time --
    casting here would add a full HBM read/write of the weights on every call.
    Results therefore match a bf16-matmul / f32-accumulate reference, not the
    exact f32 PyTorch module (documented precision change).
    """
    B, d_in = x.shape
    d_sae, d_in_w = w_enc.shape
    assert d_in_w == d_in and b_enc.shape == (d_sae,)

    x_bytes = jnp.dtype(compute_dtype).itemsize
    out_bytes = jnp.dtype(out_dtype).itemsize
    out_is_f32 = jnp.dtype(out_dtype) == jnp.dtype(jnp.float32)

    tb = _pick_tile(B, tb, 8)
    ts = _pick_tile(d_sae, ts, 128)

    # Decide whether to fold the reduction axis (tk == d_in).
    if tk is None:
        fold_k = _vmem_need(tb, ts, d_in, x_bytes, out_bytes, False) <= _FOLD_K_VMEM_BUDGET
        tk = d_in if fold_k else _pick_tile(d_in, 512, 128)
    else:
        tk = _pick_tile(d_in, tk, 128)
        fold_k = (tk == d_in)

    # Only cast when needed; weights should already be in compute_dtype.
    x_c = x if x.dtype == jnp.dtype(compute_dtype) else x.astype(compute_dtype)
    w_c = w_enc if w_enc.dtype == jnp.dtype(compute_dtype) else w_enc.astype(compute_dtype)
    b2 = b_enc.reshape(1, d_sae).astype(jnp.float32)

    n_btiles = B // tb
    n_stiles = d_sae // ts
    flops = 2 * B * d_in * d_sae

    if fold_k:
        # Grid (i, j); j varies fastest so the x block (index depends only on i)
        # is fetched once per batch tile; W is streamed once per batch tile.
        grid = (n_btiles, n_stiles)
        in_specs = [
            pl.BlockSpec((tb, d_in), lambda i, j: (i, 0)),   # x
            pl.BlockSpec((ts, d_in), lambda i, j: (j, 0)),   # W_enc
            pl.BlockSpec((1, ts), lambda i, j: (0, j)),      # b_enc
        ]
        out_specs = pl.BlockSpec((tb, ts), lambda i, j: (i, j))
        kernel = _encoder_kernel_fused
        scratch_shapes = []
        dim_sem = ("parallel", "parallel")
        x_traffic = B * d_in * x_bytes
        with_acc = False
    else:
        grid = (n_btiles, n_stiles, d_in // tk)
        in_specs = [
            pl.BlockSpec((tb, tk), lambda i, j, k: (i, k)),   # x
            pl.BlockSpec((ts, tk), lambda i, j, k: (j, k)),   # W_enc
            pl.BlockSpec((1, ts), lambda i, j, k: (0, j)),    # b_enc
        ]
        out_specs = pl.BlockSpec((tb, ts), lambda i, j, k: (i, j))
        if out_is_f32:
            kernel = _encoder_kernel_splitk_f32out
            scratch_shapes = []
            with_acc = False
        else:
            kernel = _encoder_kernel_splitk_scratch
            scratch_shapes = [pltpu.VMEM((tb, ts), jnp.float32)]
            with_acc = True
        dim_sem = ("parallel", "parallel", "arbitrary")
        # x block index depends on k (which resets per j), so x is re-streamed
        # once per d_sae tile.
        x_traffic = B * d_in * x_bytes * n_stiles

    cost = pl.CostEstimate(
        flops=flops,
        transcendentals=0,
        bytes_accessed=(x_traffic
                        + d_sae * d_in * x_bytes * n_btiles   # W streamed per batch tile
                        + d_sae * 4                           # bias
                        + B * d_sae * out_bytes),             # output writeback
    )

    need = _vmem_need(tb, ts, tk, x_bytes, out_bytes, with_acc)
    vmem_limit = max(32 * 1024 * 1024, need + 8 * 1024 * 1024)

    return pl.pallas_call(
        kernel,
        out_shape=jax.ShapeDtypeStruct((B, d_sae), out_dtype),
        grid_spec=pltpu.PrefetchScalarGridSpec(
            num_scalar_prefetch=0,
            grid=grid,
            in_specs=in_specs,
            out_specs=out_specs,
            scratch_shapes=scratch_shapes,
        ),
        compiler_params=pltpu.CompilerParams(
            dimension_semantics=dim_sem,
            vmem_limit_bytes=int(vmem_limit),
        ),
        cost_estimate=cost,
    )(x_c, w_c, b2)


# ----------------------------------------------------------------------------
# Demo / self-test
# ----------------------------------------------------------------------------
if __name__ == "__main__":
    # Small shapes, multiples of (8, 128), so the demo exercises real
    # multi-block grids on both the folded-K and split-K paths.
    B, d_in, d_sae = 16, 256, 512
    init_norm = 0.1

    key = jax.random.PRNGKey(0)
    k_w, k_x, k_mu = jax.random.split(key, 3)

    # VanillaEncoder.__init__: W_enc ~ N(0,1), row-normalised (dim=-1), * init_norm.
    w_enc = jax.random.normal(k_w, (d_sae, d_in), dtype=jnp.float32)
    w_enc = w_enc / jnp.linalg.norm(w_enc, axis=-1, keepdims=True) * init_norm
    # initialise_biases_with_mean(mean): b_enc = -mean @ W_enc.T (exercises bias path).
    mean = jax.random.normal(k_mu, (d_in,), dtype=jnp.float32)
    b_enc = -(mean @ w_enc.T)

    x = jax.random.normal(k_x, (B, d_in), dtype=jnp.float32)

    # Pre-cast weights to the compute dtype ONCE (out of the per-call path).
    w_bf = w_enc.astype(jnp.bfloat16)

    # Reference with the same bf16 matmul inputs / f32 accumulation.
    xb = x.astype(jnp.bfloat16).astype(jnp.float32)
    wb = w_bf.astype(jnp.float32)
    ref = jnp.maximum(xb @ wb.T + b_enc, 0.0)

    # 1) Folded-K path, f32 output, multi-block (2, 4) grid.
    hid_f32 = vanilla_encoder_forward(x, w_bf, b_enc, tb=8, ts=128,
                                      out_dtype=jnp.float32)
    jax.block_until_ready(hid_f32)
    assert hid_f32.shape == (B, d_sae) and hid_f32.dtype == jnp.float32
    assert jnp.allclose(hid_f32, ref, atol=1e-3, rtol=1e-3), \
        f"fold-K f32 max err {float(jnp.max(jnp.abs(hid_f32 - ref)))}"

    # 2) Folded-K path, default bf16 output, default (auto) tiles.
    hid_bf16 = vanilla_encoder_forward(x, w_bf, b_enc)
    jax.block_until_ready(hid_bf16)
    assert hid_bf16.dtype == jnp.bfloat16
    assert jnp.allclose(hid_bf16.astype(jnp.float32), ref, atol=2e-2, rtol=2e-2)

    # 3) Split-K path, f32 output (accumulates directly into the out block).
    hid_sk_f32 = vanilla_encoder_forward(x, w_bf, b_enc, tb=8, ts=128, tk=128,
                                         out_dtype=jnp.float32)
    jax.block_until_ready(hid_sk_f32)
    assert jnp.allclose(hid_sk_f32, ref, atol=1e-3, rtol=1e-3), \
        f"split-K f32 max err {float(jnp.max(jnp.abs(hid_sk_f32 - ref)))}"

    # 4) Split-K path, bf16 output (f32 scratch accumulator + cast epilogue).
    hid_sk_bf16 = vanilla_encoder_forward(x, w_bf, b_enc, tb=8, ts=128, tk=128,
                                          out_dtype=jnp.bfloat16)
    jax.block_until_ready(hid_sk_bf16)
    assert jnp.allclose(hid_sk_bf16.astype(jnp.float32), ref, atol=2e-2, rtol=2e-2)

    print("KERNEL_OK")
</pallas_src>

<mosaic_0001>
module attributes {stable_mosaic.version = 11 : i64} {
  func.func @_encoder_kernel_fused(%arg0: i32, %arg1: i32, %arg2: memref<8x256xbf16, #tpu.memory_space<vmem>>, %arg3: memref<128x256xbf16, #tpu.memory_space<vmem>>, %arg4: memref<1x128xf32, #tpu.memory_space<vmem>>, %arg5: memref<8x128xf32, #tpu.memory_space<vmem>>) attributes {dimension_semantics = [#tpu.dimension_semantics<parallel>, #tpu.dimension_semantics<parallel>], iteration_bounds = array<i64: 2, 4>, scalar_prefetch = 0 : i64, scratch_operands = 0 : i64, tpu.core_type = #tpu.core_type<tc>, window_params = [{transform_indices = @transform_0, window_bounds = array<i64: 8, 256>}, {transform_indices = @transform_1, window_bounds = array<i64: 128, 256>}, {transform_indices = @transform_2, window_bounds = array<i64: 1, 128>}, {transform_indices = @transform_3, window_bounds = array<i64: 8, 128>}]} {
    %c0 = arith.constant 0 : index
    %c0_0 = arith.constant 0 : index
    %0 = vector.load %arg2[%c0, %c0_0] : memref<8x256xbf16, #tpu.memory_space<vmem>>, vector<8x256xbf16>
    %c0_1 = arith.constant 0 : index
    %c0_2 = arith.constant 0 : index
    %1 = vector.load %arg3[%c0_1, %c0_2] : memref<128x256xbf16, #tpu.memory_space<vmem>>, vector<128x256xbf16>
    %cst = arith.constant dense<0.000000e+00> : vector<8x128xf32>
    %2 = tpu.matmul %0, %1, %cst {dimension_numbers = #tpu.dot_dimension_numbers<[1], [1], [0], [0], [0, 0, 1, 0], [], []>} : vector<8x256xbf16>, vector<128x256xbf16>, vector<8x128xf32> -> vector<8x128xf32>
    %c0_3 = arith.constant 0 : index
    %c0_4 = arith.constant 0 : index
    %3 = vector.load %arg4[%c0_3, %c0_4] : memref<1x128xf32, #tpu.memory_space<vmem>>, vector<1x128xf32>
    %4 = vector.broadcast %3 : vector<1x128xf32> to vector<8x128xf32>
    %5 = arith.addf %2, %4 : vector<8x128xf32>
    %cst_5 = arith.constant 0.000000e+00 : f32
    %6 = vector.broadcast %cst_5 : f32 to vector<8x128xf32>
    %7 = arith.maximumf %5, %6 : vector<8x128xf32>
    %c0_6 = arith.constant 0 : index
    %c0_7 = arith.constant 0 : index
    %8 = vector.load %arg5[%c0_6, %c0_7] : memref<8x128xf32, #tpu.memory_space<vmem>>, vector<8x128xf32>
    tpu.vector_store %arg5[%c0_6, %c0_7], %7 {strides = array<i32>} : memref<8x128xf32, #tpu.memory_space<vmem>>, vector<8x128xf32>,
    return
  }
  func.func @transform_0(%arg0: i32, %arg1: i32) -> (i32, i32) {
    %c0_i32 = arith.constant 0 : i32
    %c0_i32_0 = arith.constant 0 : i32
    return %arg0, %c0_i32 : i32, i32
  }
  func.func @transform_1(%arg0: i32, %arg1: i32) -> (i32, i32) {
    %c0_i32 = arith.constant 0 : i32
    %c0_i32_0 = arith.constant 0 : i32
    return %arg1, %c0_i32 : i32, i32
  }
  func.func @transform_2(%arg0: i32, %arg1: i32) -> (i32, i32) {
    %c0_i32 = arith.constant 0 : i32
    %c0_i32_0 = arith.constant 0 : i32
    return %c0_i32, %arg1 : i32, i32
  }
  func.func @transform_3(%arg0: i32, %arg1: i32) -> (i32, i32) {
    %c0_i32 = arith.constant 0 : i32
    return %arg0, %arg1 : i32, i32
  }
}

</mosaic_0001>

<bundles_post_ra>
// kernel: vanilla_encoder_forward.1
= control target key start
LH: loop header
LB: loop body
LE: loop exit
PB: predicated region body
PF: predicated region fallthrough
CT: control target
= control target key end

     0   :  { %s1108_s0 = inlined_call_operand.vmem [shape: bf16[16,256], index: 0, kind: input, shape index: {}]   ;;  %s1109_s1 = inlined_call_operand.hbm [shape: bf16[512,256], index: 1, kind: input, shape index: {}]   ;;  %s1110_s2 = inlined_call_operand.vmem [shape: f32[1,512], index: 2, kind: input, shape index: {}]   ;;  %s1111_s3 = inlined_call_operand.hbm [shape: f32[16,512], index: 3, kind: output, shape index: {}]  }
   0x1   :  { %1114 = sst [smem:[#allocation9_spill]] %s1108_s0 }
   0x2   :  { %8 = vsyncpa [#allocation3], 0 }
   0x3   :  { %10 = vsyncpa [#allocation3 + $0x1], 0 }
   0x4   :  { %11 = vsyncpa [#allocation4], 0 }
   0x5   :  { %13 = vsyncpa [#allocation4 + $0x1], 0  ;;  %s861_s12 = smov 0   ;;  %s863_s13 = smov 0  }
   0x6   :  { %s865_s14 = smov 0   ;;  %s867_s15 = smov 0  }
   0x7   :  { %s869_s16 = smov 0   ;;  %s871_s17 = smov 0  }
   0x8   :  { %s873_s18 = smov 0   ;;  %s875_s19 = smov 0  }
   0x9   :  { %s877_s20 = smov 0   ;;  %s879_s21 = smov 0  }
   0xa   :  { %s881_s22 = smov 0  }
   0xb LB: > { %s513_s23 = sadd.s32 4294967295, %s835_s22   ;;  %s514_s24 = sadd.s32 4294967294, %s835_s22   ;;  %s835_s22 = sphi %s881_s22, %s19_s22   ;;  %s831_s21 = sphi %s879_s21, %s1135_s21   ;;  %s827_s20 = sphi %s877_s20, %s1134_s20   ;;  %s823_s19 = sphi %s875_s19, %s1133_s19   ;;  %s819_s18 = sphi %s873_s18, %s1132_s18   ;;  %s815_s17 = sphi %s871_s17, %s1131_s17   ;;  %s811_s16 = sphi %s869_s16, %s1130_s16   ;;  %s807_s15 = sphi %s867_s15, %s1129_s15   ;;  %s803_s14 = sphi %s865_s14, %s1128_s14   ;;  %s799_s13 = sphi %s863_s13, %s1127_s13   ;;  %s795_s12 = sphi %s861_s12, %s1126_s12  }
   0xc   : > { %s28_s25 = sadd.s32 1, %s827_s20  ;;  %s31_s26 = sadd.s32 1, %s831_s21 }
   0xd   : > { %p29_p0 = scmp.ge.s32.totalorder %s28_s25, 4  ;;  %s64_s27 = sadd.s32 1, %s815_s17 }
   0xe   : > { %p71_p1 = scmp.ne.s32.totalorder %s815_s17, %s811_s16  ;;  %p72_p2 = scmp.eq.s32.totalorder %s835_s22, 0 }
   0xf   : > { %s1137_s25 = smov (%p29_p0, %s28_s25), 0  ;;  %s1139_s26 = smov (!%p29_p0, %s31_s26), %s831_s21 }
  0x10   : > { %s61_s28 = ssub.s32 %s827_s20, %s1137_s25  ;;  %p927_p3 = por %p72_p2, %p71_p1 }
  0x11   : > { %p33_p4 = scmp.ge.s32.totalorder %s1139_s26, 2  ;;  %p62_p5 = scmp.eq.s32.totalorder %s61_s28, 0 }
  0x12   : > { %p77_p6 = scmp.ne.s32.totalorder %s811_s16, %s807_s15  ;;  %p78_p7 = scmp.eq.s32.totalorder %s513_s23, 0 }
  0x13   : > { %s1141_s26 = smov (%p33_p4, %s1139_s26), 0  ;;  %s118_s7 = sadd.s32 1, %s803_s14 }
  0x14   : > { %1116 = sst [smem:[#allocation8_spill]] %s1141_s26  ;;  %p937_p8 = por %p78_p7, %p77_p6 }
  0x15   : > { %s935_s30 = scalar_select %p62_p5, %s815_s17, %s64_s27  }
  0x16   : > { %s113_s5 = ssub.s32 %s831_s21, %s1141_s26  ;;  %p128_p10 = scmp.ne.s32.totalorder %s803_s14, %s799_s13 }
  0x17   : > { %s115_s6 = sor.u32 %s113_s5, %s61_s28  ;;  %p129_p11 = scmp.eq.s32.totalorder %s513_s23, 7 }
  0x18   : > { %p116_p9 = scmp.eq.s32.totalorder %s115_s6, 0  ;;  %p134_p12 = scmp.ne.s32.totalorder %s799_s13, %s795_s12 }
  0x19   : > { %p951_p13 = por %p129_p11, %p128_p10  ;;  %p135_p0 = scmp.eq.s32.totalorder %s514_s24, 7 }
  0x1a   : > { %s949_s8 = scalar_select %p116_p9, %s803_s14, %s118_s7  }
  0x1b   : > { %s1118_s9 = scalar_select %p951_p13, 1, 0 }
  0x1c   : > { %p565_p1 = scmp.lt.s32.totalorder %s835_s22, 8  ;;  %p956_p2 = por %p135_p0, %p134_p12 }
  0x1d   : > { %s163_s11 = sand.u32 1, %s815_s17   ;;  %s551_s27 = sshll.u32 %s827_s20, 11 }
  0x1e   : > { %s1119_s10 = scalar_select %p956_p2, 1, 0 }
  0x1f   : > { %s517_s15 = sshll.u32 %s163_s11, 7  ;;  %s965_s23 = scalar_lea.hbm %s1109_s1, %s551_s27 }
  0x20   : > { %s167_s6 = scalar_lea.vmem [#allocation2], %s517_s15  ;;  %p971_p4 = pnand %p565_p1, %p927_p3 }
  0x21   : > { %s175_s7 = sshll.u32 %s167_s6, 4  ;;  %s976_s26 = scalar_lea.sflag [#allocation3], %s163_s11  ;;  %s967_s7 = int_to_ptr.vmem [resolvable:$true] %s175_s7 }
  0x22   : > { %s683_s27 = scalar_lea.hbm %s965_s23, 2048  ;;  %p685_p7 = pneg %p971_p4 }
  0x23   : > { %p684_p6 = scmp.ne.s32.totalorder %s965_s23, %s683_s27  ;;  %s688_s29 = scalar_lea.hbm %s1109_s1, 8192 }
  0x24   : > { %p689_p3 = scmp.lt.u32.totalorder %s965_s23, %s1109_s1  ;;  %p690_p11 = scmp.lt.u32.totalorder %s688_s29, %s683_s27 }
  0x25   : > { %p686_p9 = pnand %p685_p7, %p684_p6  ;;  %p692_p0 = scmp.lt.u32.totalorder %s683_s27, %s965_s23 }
  0x26   : > { %p691_p12 = por %p690_p11, %p689_p3 }
  0x27   : > { %p687_p10 = pneg %p686_p9 }
  0x28   : > { %p693_p1 = por %p692_p0, %p691_p12 }
  0x2a   : > { %p694_p5 = pnand %p693_p1, %p687_p10 }
  0x2c   : > { %697 = shalt.err (!%p694_p5)
}
  0x2d   : > { %s698_s11 = scalar_lea.vmem %s967_s7, 2048  ;;  %s837_s15 = smov [#allocation2]  }
  0x2e   : > { %p699_p6 = scmp.ne.s32.totalorder %s967_s7, %s698_s11  ;;  %s703_s28 = sshll.u32 %s837_s15, 4  ;;  %s704_s28 = int_to_ptr.vmem [resolvable:$false] %s703_s28 }
  0x2f   : > { %s705_s5 = scalar_lea.vmem %s704_s28, 4096  ;;  %p706_p13 = scmp.lt.s32.totalorder %s967_s7, %s704_s28 }
  0x30   : > { %p701_p9 = pnand %p699_p6, %p685_p7  ;;  %p707_p3 = scmp.lt.s32.totalorder %s705_s5, %s698_s11 }
  0x32   : > { %p702_p2 = pneg %p701_p9  ;;  %p708_p11 = por %p707_p3, %p706_p13 }
  0x34   : > { %p709_p12 = pnand %p708_p11, %p702_p2 }
  0x36   : > { %712 = shalt.err (!%p709_p12)
}
  0x37   : > { %s838_s27 = smov 128   ;;  %s839_s29 = smov 8  }
  0x38   : > { %560 = dma.hbm_to_vmem [thread:$0]  (!%p971_p4), %s965_s23, 2048, %s967_s7, %s976_s26, %s838_s27, %s838_s27, %s839_s29  }
  0x39   : > { %p189_p5 = scmp.lt.s32.totalorder %s835_s22, 9  ;;  %p1121_p7 = scmp.ge.s32.totalorder %s835_s22, 1 }
  0x3b   : > { %p190_p10 = pnand %p1121_p7, %p189_p5 }
  0x3c   : > { %s195_s6 = sand.u32 (!%p190_p10), 1, %s811_s16  }
  0x3d   : > { %193 = sbr.rel (%p190_p10) target bundleno = 364 (0x16c), region = 32  ;;  %s522_s11 = sshll.u32 (!%p190_p10), %s195_s6, 7 }
  0x3e   : > { %s196_s15 = scalar_lea.sflag (!%p190_p10), [#allocation3], %s195_s6  ;;  %s1008_s28 = scalar_lea.vmem (!%p190_p10), [#allocation2], %s522_s11 }
  0x44   : > { %786 = dma.done.wait (%p937_p8), %s196_s15, 2048  }
  0x45   : > { %788 = vsyncadd (%p937_p8), %s196_s15, 4294965248  ;;  %p230_p13 = scmp.lt.s32.totalorder %s823_s19, 1  ;;  %v657_v0 = vld [vmem:[%s1008_s28 + $0x4] ss:$8 sps:$4 sm:$0xff]   ;;  %v659_v1 = vld [vmem:[%s1008_s28] ss:$8 sps:$4 sm:$0xff]  }
  0x46   : > { %351 = vmatprep.subr.bf16.mxu0 %v657_v0  ;;  %v660_v2 = vld [vmem:[%s1008_s28 + $0x14] ss:$8 sps:$4 sm:$0xff]   ;;  %v662_v3 = vld [vmem:[%s1008_s28 + $0x10] ss:$8 sps:$4 sm:$0xff]   ;;  %s1122_s0 = sld [smem:[#allocation9_spill]]  ;;  %p236_p8 = scmp.lt.s32.totalorder %s819_s18, 3 }
  0x47   : > { %s231_s26 = scalar_select %p230_p13, %s823_s19, 1  ;;  %352 = vmatpush1.bf16.xpose.msra.mxu0 %v659_v1  ;;  %v663_v4 = vld [vmem:[%s1008_s28 + $0x24] ss:$8 sps:$4 sm:$0xff]   ;;  %v665_v7 = vld [vmem:[%s1008_s28 + $0x20] ss:$8 sps:$4 sm:$0xff]  }
  0x48   : > { %353 = vmatprep.subr.bf16.mxu0 %v660_v2  ;;  %v666_v8 = vld [vmem:[%s1008_s28 + $0x34] ss:$8 sps:$4 sm:$0xff]   ;;  %v668_v9 = vld [vmem:[%s1008_s28 + $0x30] ss:$8 sps:$4 sm:$0xff]   ;;  %v669_v10 = vld [vmem:[%s1008_s28 + $0x44] ss:$8 sps:$4 sm:$0xff]  }
  0x49   : > { %s552_s4 = sshll.u32 %s231_s26, 3  ;;  %v671_v11 = vld [vmem:[%s1008_s28 + $0x40] ss:$8 sps:$4 sm:$0xff]   ;;  %v672_v12 = vld [vmem:[%s1008_s28 + $0x54] ss:$8 sps:$4 sm:$0xff]   ;;  %s227_s5 = sand.u32 1, %s799_s13  }
  0x4a   : > { %v674_v13 = vld [vmem:[%s1008_s28 + $0x50] ss:$8 sps:$4 sm:$0xff]   ;;  %v675_v14 = vld [vmem:[%s1008_s28 + $0x64] ss:$8 sps:$4 sm:$0xff]   ;;  %v677_v15 = vld [vmem:[%s1008_s28 + $0x60] ss:$8 sps:$4 sm:$0xff]  }
  0x4b   : > { %v678_v16 = vld [vmem:[%s1008_s28 + $0x74] ss:$8 sps:$4 sm:$0xff]   ;;  %v680_v17 = vld [vmem:[%s1008_s28 + $0x70] ss:$8 sps:$4 sm:$0xff]   ;;  %s237_s27 = scalar_select %p236_p8, %s819_s18, 3 }
  0x4c   : > { %s234_s24 = scalar_lea.vmem %s1122_s0, %s552_s4  ;;  %s523_s29 = sshll.u32 %s227_s5, 3 }
  0x4d   : > { %v240_v5 = vld [vmem:[%s234_s24] sm:$0xff]  ;;  %s546_s6 = sshll.u32 %s823_s19, 2  ;;  %s238_s26 = scalar_lea.vmem %s1110_s2, %s237_s27 }
  0x4e   : > { %v528_v6 = vcombine.high %v240_v5, %v240_v5  ;;  %v527_v18 = vcombine.low %v240_v5, %v240_v5  ;;  %s405_s4 = sadd.s32 %s819_s18, %s546_s6  ;;  %v526_v19 = vld [vmem:[%s238_s26] ss:$0 sm:$0xff]  ;;  %s229_s7 = scalar_lea.vmem [#allocation5], %s523_s29 }
  0x4f   : > { %354 = vmatpush1.bf16.xpose.msra.mxu0 %v662_v3  ;;  %s547_s23 = sshll.u32 %s405_s4, 7  ;;  %s409_s24 = sshll.u32 %s229_s7, 4  ;;  %s1048_s24 = int_to_ptr.vmem [resolvable:$true] %s409_s24 }
  0x50   : > { %355 = vmatprep.subr.bf16.mxu0 %v663_v4  ;;  %383 = vmatprep.mubr.bf16.mxu0 %v528_v6  ;;  %s1046_s19 = scalar_lea.hbm %s1111_s3, %s547_s23  ;;  %s394_s18 = scalar_lea.sflag [#allocation4], %s227_s5 }
  0x51   : > { %s713_s27 = scalar_lea.vmem %s1048_s24, 128  ;;  %p1123_p4 = scmp.ne.s32.totalorder %s1118_s9, 0 }
  0x52   : > { %p714_p2 = scmp.ne.s32.totalorder %s1048_s24, %s713_s27  ;;  %s840_s29 = smov [#allocation5]  }
  0x53   : > { %s717_s6 = sshll.u32 %s840_s29, 4  ;;  %s718_s6 = int_to_ptr.vmem [resolvable:$false] %s717_s6 }
  0x54   : > { %p715_p0 = pnand %p714_p2, %p1123_p4  ;;  %s719_s11 = scalar_lea.vmem %s718_s6, 256 }
  0x55   : > { %p720_p6 = scmp.lt.s32.totalorder %s1048_s24, %s718_s6  ;;  %p721_p9 = scmp.lt.s32.totalorder %s719_s11, %s713_s27 }
  0x56   : > { %p716_p1 = pneg %p715_p0 }
  0x57   : > { %356 = vmatpush1.bf16.xpose.msra.mxu0 %v665_v7  ;;  %p722_p3 = por %p721_p9, %p720_p6 }
  0x58   : > { %357 = vmatprep.subr.bf16.mxu0 %v666_v8 }
  0x59   : > { %p723_p11 = pnand %p722_p3, %p716_p1 }
  0x5f   : > { %358 = vmatpush1.bf16.xpose.msra.mxu0 %v668_v9 }
  0x60   : > { %359 = vmatprep.subr.bf16.mxu0 %v669_v10 }
  0x67   : > { %360 = vmatpush1.bf16.xpose.msra.mxu0 %v671_v11 }
  0x68   : > { %361 = vmatprep.subr.bf16.mxu0 %v672_v12 }
  0x6f   : > { %362 = vmatpush1.bf16.xpose.msra.mxu0 %v674_v13 }
  0x70   : > { %363 = vmatprep.subr.bf16.mxu0 %v675_v14 }
  0x77   : > { %364 = vmatpush1.bf16.xpose.msra.mxu0 %v677_v15 }
  0x78   : > { %365 = vmatprep.subr.bf16.mxu0 %v678_v16 }
  0x7f   : > { %366 = vmatpush1.bf16.xpose.msra.mxu0 %v680_v17 }
  0x86   : > { %384 = vmatmul.mubr.bf16.vlgmr.msra.gmra.mrb[0].mxu0 %v527_v18 }
 0x159   : > { %v385_v20 = vpop.f32.mrb[0].mxu0 }
 0x15a   : > { %v386_v21 = vadd.f32 %v526_v19, %v385_v20  ;;  %v387_v22 = vpop.f32.mrb[1].mxu0 }
 0x15b   : > { %v388_v23 = vpop.f32.mrb[2].mxu0 }
 0x15c   : > { %v391_v24 = vmax.f32 %v386_v21, 0.0  ;;  %v389_v25 = vpop.f32.mrb[3].mxu0 }
 0x15e   : > { %392 = vst [vmem:[%s229_s7] sm:$0xff] %v391_v24 }
 0x15f   : > { %726 = shalt.err (!%p723_p11)
}
 0x160   : > { %s727_s0 = scalar_lea.hbm %s1046_s19, 128  ;;  %s731_s26 = scalar_lea.hbm %s1111_s3, 1024 }
 0x161   : > { %p728_p12 = scmp.ne.s32.totalorder %s1046_s19, %s727_s0  ;;  %p732_p10 = scmp.lt.u32.totalorder %s1046_s19, %s1111_s3 }
 0x162   : > { %p733_p13 = scmp.lt.u32.totalorder %s731_s26, %s727_s0  ;;  %p735_p2 = scmp.lt.u32.totalorder %s727_s0, %s1046_s19 }
 0x163   : > { %p729_p5 = pnand %p728_p12, %p1123_p4 }
 0x164   : > { %p734_p8 = por %p733_p13, %p732_p10 }
 0x165   : > { %p730_p7 = pneg %p729_p5 }
 0x166   : > { %p736_p0 = por %p735_p2, %p734_p8 }
 0x168   : > { %p737_p1 = pnand %p736_p0, %p730_p7 }
 0x16a   : > { %740 = shalt.err (!%p737_p1)
}
 0x16b   : > { %555 = dma.vmem_to_hbm [thread:$0]  (%p1123_p4), %s1048_s24, 128, %s1046_s19, %s394_s18  }
 0x16c PF: > { %p566_p6 = scmp.ge.s32.totalorder %s835_s22, 2  ;;  %s421_s7 = sand.u32 1, %s795_s12  }
 0x16d   : > { %p1124_p9 = scmp.ne.s32.totalorder %s1119_s10, 0  ;;  %s422_s28 = scalar_lea.sflag [#allocation4], %s421_s7 }
 0x16f   : > { %p562_p3 = pnand %p566_p6, %p1124_p9 }
 0x171   : > { %790 = dma.done.wait (!%p562_p3), %s422_s28, 128  }
 0x172   : > { %792 = vsyncadd (!%p562_p3), %s422_s28, 4294967168  ;;  %s19_s22 = sadd.s32 1, %s835_s22   ;;  %s1125_s9 = sld [smem:[#allocation8_spill]] }
 0x173   : > { %p16_p11 = scmp.ge.s32.totalorder %s19_s22, 10   ;;  %s1126_s12 = smov %s799_s13 }
 0x174   : > { %s1127_s13 = smov %s803_s14  ;;  %s1128_s14 = smov %s949_s8 }
 0x175   : > { %s1129_s15 = smov %s811_s16  ;;  %s1130_s16 = smov %s815_s17 }
 0x176   : > { %s1131_s17 = smov %s935_s30  ;;  %s1132_s18 = smov %s827_s20 }
 0x177   : > { %s1133_s19 = smov %s831_s21  ;;  %s1134_s20 = smov %s1137_s25 }
 0x178   : > { %s1135_s21 = smov %s1125_s9  ;;  %18 = sbr.rel (!%p16_p11) target bundleno = 11 (0xb), region = 83 }
 0x17f   :  { %427 = vsyncpa [#allocation3], 1 }
 0x180   :  { %429 = vsyncpa [#allocation3 + $0x1], 1 }
 0x181   :  { %430 = vsyncpa [#allocation4], 1 }
 0x182   :  { %432 = vsyncpa [#allocation4 + $0x1], 1 }

</bundles_post_ra>
